<compile_context>
chip_gen: v7x
topology: tpu7x:2x2x1
jax: 0.10.0
libtpu: 0.0.40
codegen_flags: <defaults>
</compile_context>

<pallas_src>
import functools

import jax
import jax.numpy as jnp
from jax import lax
from jax.experimental import pallas as pl
from jax.experimental.pallas import tpu as pltpu


def _round_up(x, m):
    return ((x + m - 1) // m) * m


def _hinge_tile_kernel(x_ref, tgt_ref, psum_ref, *, margin, batch, ragged):
    """One batch tile (class-major): partial sum of clamped hinge margins.

    x_ref   : (C, tile_n) logits tile — classes on sublanes, batch on lanes.
    tgt_ref : (1, tile_n) int32 targets tile (lane-dense).
    psum_ref: (1, 1, 1) f32 per-tile partial sum.
    """
    i = pl.program_id(0)
    x = x_ref[...]
    num_classes, tile_n = x.shape

    # bf16 inputs keep bf16 element-wise math (bf16 VALU on v6e/v7x halves the
    # op count); everything else runs in f32. Accumulation is always f32.
    if x.dtype != jnp.bfloat16:
        x = x.astype(jnp.float32)

    t = tgt_ref[...]                                              # (1, tile_n)
    class_ids = lax.broadcasted_iota(jnp.int32, (num_classes, tile_n), 0)

    # margin - x on the target class, margin + x elsewhere (select; no one-hot
    # temporary). `t` broadcasts across sublanes for free.
    m = jnp.where(class_ids == t, margin - x, margin + x)
    m = jnp.maximum(m, 0.0)

    if ragged:
        # (1, tile_n) lane mask for the (possibly out-of-bounds) last tile,
        # broadcast across sublanes. Keep it as a where-select AFTER the hinge
        # math so garbage/NaN lanes from the padded block cannot leak.
        lane = lax.broadcasted_iota(jnp.int32, (1, tile_n), 1)
        m = jnp.where(i * tile_n + lane < batch, m, 0.0)

    # One cross-lane reduce per tile; accumulate in f32 regardless of the
    # element-wise compute dtype.
    psum_ref[...] = jnp.reshape(jnp.sum(m.astype(jnp.float32)), (1, 1, 1))


def multiclass_hinge_loss(outputs, targets, margin=1.0, tile_n=None,
                          tile_bytes=4 * 1024 * 1024):
    """outputs: (B, C) float, targets: (B,) int -> scalar f32 loss.

    Matches the PyTorch module:
      margins = clamp(margin - x*onehot + x*(1-onehot), min=0)
      loss    = margins.sum(dim=1).mean()
    """
    batch, num_classes = outputs.shape
    itemsize = outputs.dtype.itemsize

    # Class-major logits + lane-dense targets (layout plumbing).
    x_t = jnp.transpose(outputs)                        # (C, B)
    tgt = targets.astype(jnp.int32).reshape(1, batch)   # (1, B)

    padded_b = _round_up(batch, 128)
    if tile_n is None:
        # ~tile_bytes of logits (+ 4 B/target) per tile, sized by input dtype.
        tile_n = max(1, tile_bytes // (num_classes * itemsize + 4))
    tile_n = max(128, (tile_n // 128) * 128)   # lane-dense multiple of 128
    tile_n = min(tile_n, padded_b)             # don't over-allocate small B
    if padded_b >= 2 * 128:
        # Keep >= 2 tiles so both v7x TensorCores get work.
        tile_n = min(tile_n, _round_up(pl.cdiv(padded_b, 2), 128))
    num_tiles = pl.cdiv(batch, tile_n)
    ragged = (batch % tile_n) != 0

    # Double-buffered inputs + in-vreg temporaries stay well below v7x's
    # 64 MiB physical VMEM; explicitly raise v5e's 16 MiB scoped default.
    in_tile_bytes = tile_n * (num_classes * itemsize + 4)
    vmem_limit = int(min(56 * 2**20, max(32 * 2**20, 3 * in_tile_bytes)))

    kernel = functools.partial(
        _hinge_tile_kernel, margin=float(margin), batch=batch, ragged=ragged)

    partials = pl.pallas_call(
        kernel,
        out_shape=jax.ShapeDtypeStruct((num_tiles, 1, 1), jnp.float32),
        grid=(num_tiles,),
        in_specs=[
            pl.BlockSpec((num_classes, tile_n), lambda i: (0, i)),  # logits
            pl.BlockSpec((1, tile_n), lambda i: (0, i)),            # targets
        ],
        out_specs=pl.BlockSpec((1, 1, 1), lambda i: (i, 0, 0)),
        compiler_params=pltpu.CompilerParams(
            dimension_semantics=("parallel",),
            vmem_limit_bytes=vmem_limit,
        ),
        cost_estimate=pl.CostEstimate(
            flops=6 * batch * num_classes,
            transcendentals=0,
            bytes_accessed=(batch * num_classes * itemsize + batch * 4
                            + num_tiles * 4),
        ),
    )(x_t, tgt)

    return jnp.sum(partials) / jnp.float32(batch)


def _ref_loss(outputs, targets, margin=1.0):
    """Plain-JAX mirror of the PyTorch module (f32 math)."""
    x = outputs.astype(jnp.float32)
    one_hot = jax.nn.one_hot(targets, x.shape[1], dtype=jnp.float32)
    m = margin - x * one_hot + x * (1.0 - one_hot)
    m = jnp.maximum(m, 0.0)
    return m.sum(axis=1).mean()


if __name__ == "__main__":
    key = jax.random.PRNGKey(0)
    num_classes = 16
    margin = 1.0
    k1, k2, k3, k4 = jax.random.split(key, 4)

    # Case 1: B a multiple of 128 -> auto tile sizing yields a 2-tile grid
    # (megacore split), no ragged masking.
    B1 = 256
    out1 = jax.random.normal(k1, (B1, num_classes), dtype=jnp.float32)
    tgt1 = jax.random.randint(k2, (B1,), 0, num_classes, dtype=jnp.int32)
    loss1 = multiclass_hinge_loss(out1, tgt1, margin=margin)
    jax.block_until_ready(loss1)
    ref1 = _ref_loss(out1, tgt1, margin)
    assert jnp.allclose(loss1, ref1, rtol=1e-5, atol=1e-5), (loss1, ref1)

    # Case 2: ragged batch (B % 128 != 0) -> exercises the in-kernel lane mask.
    B2 = 50
    out2 = jax.random.normal(k3, (B2, num_classes), dtype=jnp.float32)
    tgt2 = jax.random.randint(k4, (B2,), 0, num_classes, dtype=jnp.int32)
    loss2 = multiclass_hinge_loss(out2, tgt2, margin=margin)
    jax.block_until_ready(loss2)
    ref2 = _ref_loss(out2, tgt2, margin)
    assert jnp.allclose(loss2, ref2, rtol=1e-5, atol=1e-5), (loss2, ref2)

    # Case 3: bf16 logits -> bf16 element-wise math in-kernel, f32 accumulation.
    out3 = out1.astype(jnp.bfloat16)
    loss3 = multiclass_hinge_loss(out3, tgt1, margin=margin)
    jax.block_until_ready(loss3)
    ref3 = _ref_loss(out3, tgt1, margin)
    assert jnp.allclose(loss3, ref3, rtol=2e-2, atol=5e-2), (loss3, ref3)

    print("KERNEL_OK")
</pallas_src>

<mosaic_0001>
module attributes {stable_mosaic.version = 11 : i64} {
  func.func @_hinge_tile_kernel(%arg0: i32, %arg1: memref<16x128xf32, #tpu.memory_space<vmem>>, %arg2: memref<1x128xi32, #tpu.memory_space<vmem>>, %arg3: memref<1x1x1xf32, #tpu.memory_space<vmem>>) attributes {dimension_semantics = [#tpu.dimension_semantics<parallel>], iteration_bounds = array<i64: 2>, scalar_prefetch = 0 : i64, scratch_operands = 0 : i64, tpu.core_type = #tpu.core_type<tc>, window_params = [{transform_indices = @transform_0, window_bounds = array<i64: 16, 128>}, {transform_indices = @transform_1, window_bounds = array<i64: 1, 128>}, {transform_indices = @transform_2, window_bounds = array<i64: 1, 1, 1>}]} {
    %c0 = arith.constant 0 : index
    %c0_0 = arith.constant 0 : index
    %0 = vector.load %arg1[%c0, %c0_0] : memref<16x128xf32, #tpu.memory_space<vmem>>, vector<16x128xf32>
    %c0_1 = arith.constant 0 : index
    %c0_2 = arith.constant 0 : index
    %1 = vector.load %arg2[%c0_1, %c0_2] : memref<1x128xi32, #tpu.memory_space<vmem>>, vector<1x128xi32>
    %2 = tpu.iota {dimensions = array<i32: 0>} : vector<16x128xi32>
    %3 = vector.broadcast %1 : vector<1x128xi32> to vector<16x128xi32>
    %4 = arith.cmpi eq, %2, %3 : vector<16x128xi32>
    %cst = arith.constant 1.000000e+00 : f32
    %5 = vector.broadcast %cst : f32 to vector<16x128xf32>
    %6 = arith.subf %5, %0 : vector<16x128xf32>
    %cst_3 = arith.constant 1.000000e+00 : f32
    %7 = vector.broadcast %cst_3 : f32 to vector<16x128xf32>
    %8 = arith.addf %7, %0 : vector<16x128xf32>
    %9 = arith.select %4, %6, %8 : vector<16x128xi1>, vector<16x128xf32>
    %cst_4 = arith.constant 0.000000e+00 : f32
    %10 = vector.broadcast %cst_4 : f32 to vector<16x128xf32>
    %11 = arith.maximumf %9, %10 : vector<16x128xf32>
    %12 = vector.shape_cast %11 : vector<16x128xf32> to vector<1x16x128xf32>
    %cst_5 = arith.constant dense<0.000000e+00> : vector<1xf32>
    %13 = vector.multi_reduction <add>, %12, %cst_5 [1, 2] : vector<1x16x128xf32> to vector<1xf32>
    %14 = vector.shape_cast %13 : vector<1xf32> to vector<1x1x1xf32>
    %15 = vector.extract %14[0, 0, 0] : f32 from vector<1x1x1xf32>
    %16 = vector.broadcast %15 : f32 to vector<1x1x1xf32>
    %c0_6 = arith.constant 0 : index
    %c0_7 = arith.constant 0 : index
    %c0_8 = arith.constant 0 : index
    %17 = vector.load %arg3[%c0_6, %c0_7, %c0_8] : memref<1x1x1xf32, #tpu.memory_space<vmem>>, vector<1x1x1xf32>
    tpu.vector_store %arg3[%c0_6, %c0_7, %c0_8], %16 {strides = array<i32>} : memref<1x1x1xf32, #tpu.memory_space<vmem>>, vector<1x1x1xf32>,
    return
  }
  func.func @transform_0(%arg0: i32) -> (i32, i32) {
    %c0_i32 = arith.constant 0 : i32
    %c0_i32_0 = arith.constant 0 : i32
    return %c0_i32, %arg0 : i32, i32
  }
  func.func @transform_1(%arg0: i32) -> (i32, i32) {
    %c0_i32 = arith.constant 0 : i32
    %c0_i32_0 = arith.constant 0 : i32
    return %c0_i32, %arg0 : i32, i32
  }
  func.func @transform_2(%arg0: i32) -> (i32, i32, i32) {
    %c0_i32 = arith.constant 0 : i32
    %c0_i32_0 = arith.constant 0 : i32
    %c0_i32_1 = arith.constant 0 : i32
    return %arg0, %c0_i32, %c0_i32_0 : i32, i32, i32
  }
}

</mosaic_0001>

<bundles_post_ra>
// kernel: tpu_custom_call.1
= control target key start
LH: loop header
LB: loop body
LE: loop exit
PB: predicated region body
PF: predicated region fallthrough
CT: control target
= control target key end

     0   :  { %7 = vsyncpa [#allocation3], 0  ;;  %s526_s0 = inlined_call_operand.hbm [shape: f32[16,256], index: 0, kind: input, shape index: {}]   ;;  %s527_s1 = inlined_call_operand.vmem [shape: s32[1,256], index: 1, kind: input, shape index: {}]   ;;  %s528_s2 = inlined_call_operand.vmem [shape: f32[2,1,1], index: 2, kind: output, shape index: {}]  }
   0x1   :  { %9 = vsyncpa [#allocation3 + $0x1], 0  ;;  %s413_s9 = smov 0   ;;  %s415_s10 = smov 0  }
   0x2   :  { %s417_s11 = smov 0   ;;  %s419_s12 = smov 0  }
   0x3 LB: > { %s432_s13 = sadd.s32 4294967295, %s392_s12   ;;  %s435_s14 = sadd.s32 1, %s392_s12   ;;  %s392_s12 = sphi %s419_s12, %s534_s12   ;;  %s388_s11 = sphi %s417_s11, %s533_s11   ;;  %s384_s10 = sphi %s415_s10, %s532_s10   ;;  %s380_s9 = sphi %s413_s9, %s531_s9  }
   0x4   : > { %s19_s15 = ssub.s32 %s392_s12, %s435_s14  ;;  %s22_s16 = sadd.s32 1, %s388_s11 }
   0x5   : > { %p20_p0 = scmp.eq.s32.totalorder %s19_s15, 0  ;;  %p29_p1 = scmp.ne.s32.totalorder %s388_s11, %s384_s10 }
   0x6   : > { %p30_p2 = scmp.eq.s32.totalorder %s392_s12, 0  ;;  %p35_p3 = scmp.ne.s32.totalorder %s384_s10, %s380_s9 }
   0x7   : > { %s445_s17 = scalar_select %p20_p0, %s388_s11, %s22_s16  }
   0x8   : > { %p31_p4 = por %p30_p2, %p29_p1  ;;  %p36_p5 = scmp.eq.s32.totalorder %s432_s13, 0 }
   0x9   : > { %p292_p6 = scmp.lt.s32.totalorder %s392_s12, 2  ;;  %s111_s19 = sand.u32 1, %s388_s11  }
   0xa   : > { %p449_p7 = por %p36_p5, %p35_p3  ;;  %s277_s20 = sshll.u32 %s111_s19, 4 }
   0xb   : > { %s278_s21 = sshll.u32 %s392_s12, 7  ;;  %s115_s25 = scalar_lea.vmem [#allocation2], %s277_s20 }
   0xc   : > { %s458_s24 = scalar_lea.hbm %s526_s0, %s278_s21  ;;  %s121_s26 = sshll.u32 %s115_s25, 4  ;;  %s460_s26 = int_to_ptr.vmem [resolvable:$true] %s121_s26 }
   0xd   : > { %p462_p8 = pnand %p292_p6, %p31_p4  ;;  %s466_s28 = scalar_lea.sflag [#allocation3], %s111_s19 }
   0xe   : > { %s328_s29 = scalar_lea.hbm %s458_s24, 256  ;;  %s333_s4 = scalar_lea.hbm %s526_s0, 512 }
   0xf   : > { %p329_p9 = scmp.ne.s32.totalorder %s458_s24, %s328_s29  ;;  %p330_p10 = pneg %p462_p8 }
  0x10   : > { %p334_p13 = scmp.lt.u32.totalorder %s458_s24, %s526_s0  ;;  %p335_p0 = scmp.lt.u32.totalorder %s333_s4, %s328_s29 }
  0x11   : > { %p331_p11 = pnand %p330_p10, %p329_p9  ;;  %p337_p2 = scmp.lt.u32.totalorder %s328_s29, %s458_s24 }
  0x12   : > { %p336_p1 = por %p335_p0, %p334_p13 }
  0x13   : > { %p332_p12 = pneg %p331_p11 }
  0x14   : > { %p338_p3 = por %p337_p2, %p336_p1 }
  0x16   : > { %p339_p4 = pnand %p338_p3, %p332_p12 }
  0x18   : > { %342 = shalt.err (!%p339_p4)
}
  0x19   : > { %s343_s7 = scalar_lea.vmem %s460_s26, 256  ;;  %s394_s8 = smov [#allocation2]  }
  0x1a   : > { %p344_p5 = scmp.ne.s32.totalorder %s460_s26, %s343_s7  ;;  %s348_s9 = sshll.u32 %s394_s8, 4  ;;  %s349_s9 = int_to_ptr.vmem [resolvable:$false] %s348_s9 }
  0x1b   : > { %s350_s15 = scalar_lea.vmem %s349_s9, 512  ;;  %p351_p11 = scmp.lt.s32.totalorder %s460_s26, %s349_s9 }
  0x1c   : > { %p346_p6 = pnand %p344_p5, %p330_p10  ;;  %p352_p13 = scmp.lt.s32.totalorder %s350_s15, %s343_s7 }
  0x1e   : > { %p347_p9 = pneg %p346_p6  ;;  %p353_p0 = por %p352_p13, %p351_p11 }
  0x20   : > { %p354_p1 = pnand %p353_p0, %p347_p9 }
  0x22   : > { %357 = shalt.err (!%p354_p1)
}
  0x23   : > { %s395_s16 = smov 256   ;;  %s396_s19 = smov 128  }
  0x24   : > { %s397_s20 = smov 8   ;;  %p279_p10 = scmp.ge.s32.totalorder %s392_s12, 1 }
  0x25   : > { %291 = dma.hbm_to_vmem [thread:$0]  (!%p462_p8), %s458_s24, 256, %s460_s26, %s466_s28, %s395_s16, %s396_s19, %s397_s20  }
  0x26   : > { %p135_p12 = scmp.lt.s32.totalorder %s392_s12, 3 }
  0x28   : > { %p136_p2 = pnand %p279_p10, %p135_p12 }
  0x29   : > { %s141_s21 = sand.u32 (!%p136_p2), 1, %s384_s10  }
  0x2a   : > { %139 = sbr.rel (%p136_p2) target bundleno = 268 (0x10c), region = 28  ;;  %s280_s22 = sshll.u32 (!%p136_p2), %s141_s21, 4 }
  0x2b   : > { %s142_s23 = scalar_lea.sflag (!%p136_p2), [#allocation3], %s141_s21  ;;  %s145_s25 = scalar_lea.vmem (!%p136_p2), [#allocation2], %s280_s22 }
  0x31   : > { %375 = dma.done.wait (%p449_p7), %s142_s23, 256  }
  0x32   : > { %377 = vsyncadd (%p449_p7), %s142_s23, 4294967040  ;;  %p167_p3 = scmp.lt.s32.totalorder %s432_s13, 1  ;;  %v176_v0 = vlaneseq  ;;  %v173_v3 = vld [vmem:[%s145_s25] sm:$0xff]  ;;  %v174_v4 = vld [vmem:[%s145_s25 + $0x8] sm:$0xff]  ;;  %vm204_vm2 = vcmask 0  }
  0x33   : > { %v185_v6 = vsub.f32 1.0, %v173_v3  ;;  %v186_v7 = vsub.f32 1.0, %v174_v4  ;;  %v187_v8 = vadd.f32 1.0, %v173_v3  ;;  %v188_v9 = vadd.f32 1.0, %v174_v4 }
  0x34   : > { %s536_s13 = smov (!%p167_p3, %s432_s13), 1  ;;  %v177_v1 = vshrl.u32 %v176_v0, 7 }
  0x35   : > { %s169_s26 = scalar_lea.vmem %s527_s1, %s536_s13  ;;  %s172_s28 = scalar_lea.vmem %s528_s2, %s536_s13 }
  0x36   : > { %v178_v2 = vadd.s32 8, %v177_v1  ;;  %v281_v5 = vld [vmem:[%s169_s26] ss:$0 sm:$0xff] }
  0x37   : > { %vm183_vm0 = vcmp.eq.s32.totalorder %v177_v1, %v281_v5 }
  0x38   : > { %vm184_vm1 = vcmp.eq.s32.totalorder %v178_v2, %v281_v5  ;;  %v189_v10 = vsel %vm183_vm0, %v185_v6, %v187_v8 }
  0x39   : > { %v190_v11 = vsel %vm184_vm1, %v186_v7, %v188_v9  ;;  %v191_v12 = vmax.f32 %v189_v10, 0.0 }
  0x3a   : > { %v192_v13 = vmax.f32 %v190_v11, 0.0 }
  0x3c   : > { %v193_v14 = vadd.f32 %v192_v13, %v191_v12 }
  0x3e   : > { %194 = vadd.xlane.f32.xlu0 %v193_v14 }
  0xcb   : > { %v195_v15 = vpop.xlane.xlu0 %194 }
  0xcc   : > { %v196_v16 = vrot.slane %v195_v15, 4 }
  0xce   : > { %v197_v17 = vadd.f32 %v196_v16, %v195_v15 }
  0xd0   : > { %v198_v18 = vrot.slane %v197_v17, 2 }
  0xd2   : > { %v199_v19 = vadd.f32 %v198_v18, %v197_v17 }
  0xd4   : > { %v200_v20 = vrot.slane %v199_v19, 1 }
  0xd6   : > { %v201_v21 = vadd.f32 %v200_v20, %v199_v19 }
  0xd8   : > { %284 = vpush %v201_v21 }
 0x109   : > { %s285_s29 = spop %284 }
 0x10a   : > { %v203_v22 = vstv %s285_s29 }
 0x10b   : > { %205 = vst.msk [vmem:[%s172_s28] sm:$0x1] %vm204_vm2, %v203_v22 }
 0x10c PF: > { %p12_p7 = scmp.ge.s32.totalorder %s435_s14, 4   ;;  %s531_s9 = smov %s384_s10 }
 0x10d   : > { %s532_s10 = smov %s388_s11  ;;  %s533_s11 = smov %s445_s17 }
 0x10e   : > { %s534_s12 = smov %s435_s14  ;;  %14 = sbr.rel (!%p12_p7) target bundleno = 3 (0x3), region = 71 }
 0x115   :  { %223 = vsyncpa [#allocation3], 1 }
 0x116   :  { %225 = vsyncpa [#allocation3 + $0x1], 1 }

</bundles_post_ra>
